<compile_context>
chip_gen: v7x
topology: tpu7x:2x2x1
jax: 0.10.0
libtpu: 0.0.40
codegen_flags: <defaults>
</compile_context>

<pallas_src>
import functools

import jax
import jax.numpy as jnp
from jax.experimental import pallas as pl
from jax.experimental.pallas import tpu as pltpu


# ----------------------------------------------------------------------------
# Helpers
# ----------------------------------------------------------------------------
def _shift_lanes(x, d):
    """result[..., i] = x[..., i + d] if 0 <= i + d < n else 0   (static d)."""
    n = x.shape[-1]
    if d == 0:
        return x
    if abs(d) >= n:
        return jnp.zeros_like(x)
    fill = jnp.zeros(x.shape[:-1] + (abs(d),), x.dtype)
    if d > 0:
        return jnp.concatenate([x[..., d:], fill], axis=-1)
    return jnp.concatenate([fill, x[..., :n + d]], axis=-1)


def _pick_cout_tile(cout):
    """Largest divisor of cout <= 16 that still leaves >= 2 grid steps."""
    best = 1
    for d in range(1, min(cout, 16) + 1):
        if cout % d == 0 and (cout // d >= 2 or cout == 1):
            best = d
    return best


# ----------------------------------------------------------------------------
# Fast path: stride == 1, "same" geometry (Ho == H, Wo == W).
# Spatial dims flattened onto the lane axis; channels on sublanes.
# ----------------------------------------------------------------------------
def _sepconv_same_kernel(wdw_ref, wpw_ref, wmask_ref, x_ref, o_ref, dw_ref, *,
                         k, padding, width):
    # wdw_ref  : VMEM (k*k, cin, 1) f32   depthwise weights, tap-major
    # wpw_ref  : VMEM (1, ct, cin)  f32   pointwise weights for this cout tile
    # wmask_ref: VMEM (k, H*W)      f32   1.0 where 0 <= ow + kw - p < W
    # x_ref    : VMEM (1, cin, H*W)       one image (native dtype)
    # o_ref    : VMEM (1, 1, ct, H*W)
    # dw_ref   : VMEM scratch (cin, H*W) f32  depthwise result, reused across
    #            all cout tiles of the same image
    cin = x_ref.shape[1]
    hw = x_ref.shape[2]
    ct = o_ref.shape[2]

    # ---- depthwise KxK (stride 1, "same"): computed once per image ----------
    @pl.when(pl.program_id(1) == 0)
    def _depthwise():
        x32 = x_ref[0].astype(jnp.float32)            # single upcast: (cin, hw)
        wm = wmask_ref[...]                           # (k, hw)
        acc = jnp.zeros((cin, hw), jnp.float32)
        for kw in range(k):
            # One column shift + one boundary mask per kw (shared over kh).
            col = _shift_lanes(x32, kw - padding) * wm[kw:kw + 1, :]
            for kh in range(k):
                # Row shift is a lane shift by a multiple of W; zero fill
                # realizes the top/bottom zero padding.
                tap = _shift_lanes(col, (kh - padding) * width)
                acc = acc + tap * wdw_ref[kh * k + kw]   # (cin,1) lane-bcast MAC
        dw_ref[...] = acc

    # ---- pointwise 1x1 for this cout tile ------------------------------------
    dw = dw_ref[...]                                  # (cin, hw) f32
    wpw = wpw_ref[0]                                  # (ct, cin) f32
    if cin >= 16:
        # Wide-channel stages: let the MXU do (ct, cin) @ (cin, hw).
        out = jnp.dot(wpw, dw, preferred_element_type=jnp.float32)
    else:
        # Tiny cin: VPU outer-product accumulation, lane-dense over hw.
        out = jnp.zeros((ct, hw), jnp.float32)
        for ci in range(cin):
            out = out + wpw[:, ci:ci + 1] * dw[ci:ci + 1, :]
    o_ref[0, 0] = out.astype(o_ref.dtype)


def _sepconv_same(x_nchw, w_dw, w_pw, *, padding):
    n, cin, h, w = x_nchw.shape
    k = w_dw.shape[2]
    cout = w_pw.shape[0]
    hw = h * w

    ct = _pick_cout_tile(cout)
    n_ct = cout // ct

    # Weight layouts for sublane-broadcast MACs.
    wdw_v = jnp.transpose(w_dw.reshape(cin, k * k).astype(jnp.float32), (1, 0))
    wdw_v = wdw_v.reshape(k * k, cin, 1)                       # [kh*k+kw, ci, 0]
    wpw_v = w_pw.reshape(cout, cin).astype(jnp.float32).reshape(n_ct, ct, cin)

    # W-boundary masks (one per kw), flattened to the (H*W) lane axis.
    owi = jnp.arange(w)[None, :] + jnp.arange(k)[:, None] - padding   # (k, w)
    wmask = ((owi >= 0) & (owi < w)).astype(jnp.float32)              # (k, w)
    wmask = jnp.broadcast_to(wmask[:, None, :], (k, h, w)).reshape(k, hw)

    x3 = x_nchw.reshape(n, cin, hw)    # free (contiguous) reshape, no HBM copy

    kernel = functools.partial(_sepconv_same_kernel, k=k, padding=padding, width=w)

    # Raise the scoped VMEM limit only when the blocks actually need it.
    itemsize = jnp.dtype(x_nchw.dtype).itemsize
    blk_bytes = cin * hw * itemsize + ct * hw * itemsize + cin * hw * 4
    need = 4 * blk_bytes + (1 << 20)
    vmem_limit = int(min(need, 96 * 2 ** 20)) if need > 32 * 2 ** 20 else None

    out4 = pl.pallas_call(
        kernel,
        out_shape=jax.ShapeDtypeStruct((n, n_ct, ct, hw), x_nchw.dtype),
        grid_spec=pltpu.PrefetchScalarGridSpec(
            num_scalar_prefetch=0,
            grid=(n, n_ct),
            in_specs=[
                pl.BlockSpec((k * k, cin, 1), lambda b, j: (0, 0, 0)),   # wdw_v
                pl.BlockSpec((1, ct, cin), lambda b, j: (j, 0, 0)),      # wpw_v
                pl.BlockSpec((k, hw), lambda b, j: (0, 0)),              # wmask
                pl.BlockSpec((1, cin, hw), lambda b, j: (b, 0, 0)),      # image
            ],
            out_specs=pl.BlockSpec((1, 1, ct, hw), lambda b, j: (b, j, 0, 0)),
            scratch_shapes=[pltpu.VMEM((cin, hw), jnp.float32)],
        ),
        compiler_params=pltpu.CompilerParams(
            dimension_semantics=("parallel", "arbitrary"),
            vmem_limit_bytes=vmem_limit),
    )(wdw_v, wpw_v, wmask, x3)

    return out4.reshape(n, cout, h, w)   # free reshape (row-major contiguous)


# ----------------------------------------------------------------------------
# Generic fallback: stride != 1 or non-"same" geometry.
# ----------------------------------------------------------------------------
def _sepconv_generic_kernel(wdw_ref, wpw_ref, x_ref, o_ref, *scratch,
                            k, stride, padding):
    # wdw_ref: SMEM (cin*k*k,) f32 ; wpw_ref: SMEM (cout*cin,) f32
    # x_ref  : VMEM (1, cin, H, W) ; o_ref : VMEM (1, cout, Ho, Wo)
    # scratch: (xp_ref,) VMEM (cin, Hp, Wp) when padding > 0, else ()
    cin = x_ref.shape[1]
    h, w = x_ref.shape[2], x_ref.shape[3]
    cout = o_ref.shape[1]
    ho, wo = o_ref.shape[2], o_ref.shape[3]

    if padding > 0:
        xp_ref = scratch[0]
        hp, wp = xp_ref.shape[1], xp_ref.shape[2]
        # Zero only the four thin halo strips, then copy the interior once
        # (no full-tile zero pass).
        zrow = jnp.zeros((cin, padding, wp), xp_ref.dtype)
        zcol = jnp.zeros((cin, hp, padding), xp_ref.dtype)
        xp_ref[:, pl.ds(0, padding), :] = zrow
        xp_ref[:, pl.ds(h + padding, padding), :] = zrow
        xp_ref[:, :, pl.ds(0, padding)] = zcol
        xp_ref[:, :, pl.ds(w + padding, padding)] = zcol
        xp_ref[:, pl.ds(padding, h), pl.ds(padding, w)] = x_ref[0]

        def tap(ci, kh, kw):
            if stride == 1:
                return xp_ref[ci, pl.ds(kh, ho), pl.ds(kw, wo)]
            # TODO(synk): strided lane (W) reads can lower poorly; production
            # stride>1 should compute dense and compress once per row.
            return xp_ref[ci, pl.ds(kh, ho, stride), pl.ds(kw, wo, stride)]
    else:
        # padding == 0: read taps straight from the input block, no scratch copy.
        def tap(ci, kh, kw):
            if stride == 1:
                return x_ref[0, ci, pl.ds(kh, ho), pl.ds(kw, wo)]
            return x_ref[0, ci, pl.ds(kh, ho, stride), pl.ds(kw, wo, stride)]

    # depthwise KxK: VPU scalar-broadcast MACs, f32 accumulation
    dw = []
    for ci in range(cin):
        acc = None
        for kh in range(k):
            for kw in range(k):
                wtap = wdw_ref[ci * k * k + kh * k + kw]          # SMEM scalar
                term = tap(ci, kh, kw).astype(jnp.float32) * wtap
                acc = term if acc is None else acc + term
        dw.append(acc)

    # pointwise 1x1: scalar-broadcast MACs over cin
    for co in range(cout):
        y = dw[0] * wpw_ref[co * cin]
        for ci in range(1, cin):
            y = y + dw[ci] * wpw_ref[co * cin + ci]
        o_ref[0, co] = y.astype(o_ref.dtype)


def _sepconv_generic(x_nchw, w_dw, w_pw, *, stride, padding):
    n, cin, h, w = x_nchw.shape
    k = w_dw.shape[2]
    cout = w_pw.shape[0]
    ho = (h + 2 * padding - k) // stride + 1
    wo = (w + 2 * padding - k) // stride + 1
    hp, wp = h + 2 * padding, w + 2 * padding

    wdw_flat = w_dw.reshape(cin * k * k).astype(jnp.float32)
    wpw_flat = w_pw.reshape(cout * cin).astype(jnp.float32)

    kernel = functools.partial(_sepconv_generic_kernel,
                               k=k, stride=stride, padding=padding)
    scratch = [pltpu.VMEM((cin, hp, wp), x_nchw.dtype)] if padding > 0 else []

    return pl.pallas_call(
        kernel,
        out_shape=jax.ShapeDtypeStruct((n, cout, ho, wo), x_nchw.dtype),
        grid_spec=pltpu.PrefetchScalarGridSpec(
            num_scalar_prefetch=0,
            grid=(n,),
            in_specs=[
                pl.BlockSpec(memory_space=pltpu.MemorySpace.SMEM),   # wdw_flat
                pl.BlockSpec(memory_space=pltpu.MemorySpace.SMEM),   # wpw_flat
                pl.BlockSpec((1, cin, h, w), lambda b: (b, 0, 0, 0)),
            ],
            out_specs=pl.BlockSpec((1, cout, ho, wo), lambda b: (b, 0, 0, 0)),
            scratch_shapes=scratch,
        ),
        compiler_params=pltpu.CompilerParams(
            dimension_semantics=("parallel",)),
    )(wdw_flat, wpw_flat, x_nchw)


# ----------------------------------------------------------------------------
# Public entry point
# ----------------------------------------------------------------------------
def separable_conv2d(x_nchw, w_dw, w_pw, *, stride, padding):
    """SeparableConv2d forward (bias=False).

    x_nchw : (N, Cin, H, W)
    w_dw   : (Cin, 1, K, K)     -- PyTorch depthwise conv weight layout
    w_pw   : (Cout, Cin, 1, 1)  -- PyTorch pointwise conv weight layout
    returns: (N, Cout, Ho, Wo)
    """
    n, cin, h, w = x_nchw.shape
    k = w_dw.shape[2]
    ho = (h + 2 * padding - k) // stride + 1
    wo = (w + 2 * padding - k) // stride + 1
    if stride == 1 and ho == h and wo == w:
        return _sepconv_same(x_nchw, w_dw, w_pw, padding=padding)
    return _sepconv_generic(x_nchw, w_dw, w_pw, stride=stride, padding=padding)


def _reference(x_nchw, w_dw, w_pw, *, stride, padding):
    cin = x_nchw.shape[1]
    dn = jax.lax.conv_dimension_numbers(
        x_nchw.shape, w_dw.shape, ("NCHW", "OIHW", "NCHW"))
    y = jax.lax.conv_general_dilated(
        x_nchw, w_dw, window_strides=(stride, stride),
        padding=[(padding, padding), (padding, padding)],
        dimension_numbers=dn, feature_group_count=cin)
    dn2 = jax.lax.conv_dimension_numbers(
        y.shape, w_pw.shape, ("NCHW", "OIHW", "NCHW"))
    return jax.lax.conv_general_dilated(
        y, w_pw, window_strides=(1, 1), padding=[(0, 0), (0, 0)],
        dimension_numbers=dn2)


if __name__ == "__main__":
    # SeparableConv2d(in_channels=4, out_channels=8, dw_kernel=3, dw_stride=1,
    #                 dw_padding=1, bias=False)
    batch, cin, cout, hw_side = 2, 4, 8, 16
    k, stride, padding = 3, 1, 1

    key = jax.random.PRNGKey(0)
    kx, kdw, kpw = jax.random.split(key, 3)
    x = jax.random.normal(kx, (batch, cin, hw_side, hw_side), dtype=jnp.float32)
    w_dw = jax.random.normal(kdw, (cin, 1, k, k), dtype=jnp.float32) * 0.1
    w_pw = jax.random.normal(kpw, (cout, cin, 1, 1), dtype=jnp.float32) * 0.1

    out = separable_conv2d(x, w_dw, w_pw, stride=stride, padding=padding)
    out = jax.block_until_ready(out)

    ref = _reference(x, w_dw, w_pw, stride=stride, padding=padding)
    assert out.shape == ref.shape, (out.shape, ref.shape)
    err = float(jnp.max(jnp.abs(out - ref)))
    assert err < 1e-4, err

    print("KERNEL_OK")
</pallas_src>

<mosaic_0001>
module attributes {stable_mosaic.version = 11 : i64} {
  func.func @_sepconv_same_kernel(%arg0: i32, %arg1: i32, %arg2: memref<9x4x1xf32, #tpu.memory_space<vmem>>, %arg3: memref<1x4x4xf32, #tpu.memory_space<vmem>>, %arg4: memref<3x256xf32, #tpu.memory_space<vmem>>, %arg5: memref<1x4x256xf32, #tpu.memory_space<vmem>>, %arg6: memref<1x1x4x256xf32, #tpu.memory_space<vmem>>, %arg7: memref<4x256xf32, #tpu.memory_space<vmem>>) attributes {dimension_semantics = [#tpu.dimension_semantics<parallel>, #tpu.dimension_semantics<arbitrary>], iteration_bounds = array<i64: 2, 2>, scalar_prefetch = 0 : i64, scratch_operands = 1 : i64, tpu.core_type = #tpu.core_type<tc>, window_params = [{pipeline_mode = #tpu.pipeline_mode<synchronous>, transform_indices = @transform_0, window_bounds = array<i64: 9, 4, 1>}, {transform_indices = @transform_1, window_bounds = array<i64: 1, 4, 4>}, {pipeline_mode = #tpu.pipeline_mode<synchronous>, transform_indices = @transform_2, window_bounds = array<i64: 3, 256>}, {transform_indices = @transform_3, window_bounds = array<i64: 1, 4, 256>}, {transform_indices = @transform_4, window_bounds = array<i64: 1, 1, 4, 256>}]} {
    %c0_i32 = arith.constant 0 : i32
    %0 = arith.cmpi eq, %arg1, %c0_i32 : i32
    %1 = arith.extui %0 : i1 to i32
    %c0_i32_0 = arith.constant 0 : i32
    %2 = arith.cmpi ne, %1, %c0_i32_0 : i32
    scf.if %2 {
      %c0_9 = arith.constant 0 : index
      %c0_10 = arith.constant 0 : index
      %c0_11 = arith.constant 0 : index
      %34 = vector.load %arg5[%c0_9, %c0_10, %c0_11] : memref<1x4x256xf32, #tpu.memory_space<vmem>>, vector<1x4x256xf32>
      %35 = vector.shape_cast %34 : vector<1x4x256xf32> to vector<4x256xf32>
      %c0_12 = arith.constant 0 : index
      %c0_13 = arith.constant 0 : index
      %36 = vector.load %arg4[%c0_12, %c0_13] : memref<3x256xf32, #tpu.memory_space<vmem>>, vector<3x256xf32>
      %cst_14 = arith.constant 0.000000e+00 : f32
      %37 = vector.broadcast %cst_14 : f32 to vector<4x256xf32>
      %cst_15 = arith.constant 0.000000e+00 : f32
      %38 = vector.broadcast %cst_15 : f32 to vector<4x1xf32>
      %39 = vector.extract_strided_slice %35 {offsets = [0, 0], sizes = [4, 255], strides = [1, 1]} : vector<4x256xf32> to vector<4x255xf32>
      %40 = tpu.concatenate %38, %39 in 1 : vector<4x1xf32>, vector<4x255xf32> -> vector<4x256xf32>
      %41 = vector.extract_strided_slice %36 {offsets = [0, 0], sizes = [1, 256], strides = [1, 1]} : vector<3x256xf32> to vector<1x256xf32>
      %42 = vector.broadcast %41 : vector<1x256xf32> to vector<4x256xf32>
      %43 = arith.mulf %40, %42 : vector<4x256xf32>
      %cst_16 = arith.constant 0.000000e+00 : f32
      %44 = vector.broadcast %cst_16 : f32 to vector<4x16xf32>
      %45 = vector.extract_strided_slice %43 {offsets = [0, 0], sizes = [4, 240], strides = [1, 1]} : vector<4x256xf32> to vector<4x240xf32>
      %46 = tpu.concatenate %44, %45 in 1 : vector<4x16xf32>, vector<4x240xf32> -> vector<4x256xf32>
      %c0_17 = arith.constant 0 : index
      %c0_18 = arith.constant 0 : index
      %c0_19 = arith.constant 0 : index
      %47 = vector.load %arg2[%c0_17, %c0_18, %c0_19] : memref<9x4x1xf32, #tpu.memory_space<vmem>>, vector<1x4x1xf32>
      %48 = vector.shape_cast %47 : vector<1x4x1xf32> to vector<4x1xf32>
      %49 = vector.broadcast %48 : vector<4x1xf32> to vector<4x256xf32>
      %50 = arith.mulf %46, %49 : vector<4x256xf32>
      %51 = arith.addf %37, %50 : vector<4x256xf32>
      %c3 = arith.constant 3 : index
      %c0_20 = arith.constant 0 : index
      %c0_21 = arith.constant 0 : index
      %52 = vector.load %arg2[%c3, %c0_20, %c0_21] : memref<9x4x1xf32, #tpu.memory_space<vmem>>, vector<1x4x1xf32>
      %53 = vector.shape_cast %52 : vector<1x4x1xf32> to vector<4x1xf32>
      %54 = vector.broadcast %53 : vector<4x1xf32> to vector<4x256xf32>
      %55 = arith.mulf %43, %54 : vector<4x256xf32>
      %56 = arith.addf %51, %55 : vector<4x256xf32>
      %cst_22 = arith.constant 0.000000e+00 : f32
      %57 = vector.broadcast %cst_22 : f32 to vector<4x16xf32>
      %58 = vector.extract_strided_slice %43 {offsets = [0, 16], sizes = [4, 240], strides = [1, 1]} : vector<4x256xf32> to vector<4x240xf32>
      %59 = tpu.concatenate %58, %57 in 1 : vector<4x240xf32>, vector<4x16xf32> -> vector<4x256xf32>
      %c6 = arith.constant 6 : index
      %c0_23 = arith.constant 0 : index
      %c0_24 = arith.constant 0 : index
      %60 = vector.load %arg2[%c6, %c0_23, %c0_24] : memref<9x4x1xf32, #tpu.memory_space<vmem>>, vector<1x4x1xf32>
      %61 = vector.shape_cast %60 : vector<1x4x1xf32> to vector<4x1xf32>
      %62 = vector.broadcast %61 : vector<4x1xf32> to vector<4x256xf32>
      %63 = arith.mulf %59, %62 : vector<4x256xf32>
      %64 = arith.addf %56, %63 : vector<4x256xf32>
      %65 = vector.extract_strided_slice %36 {offsets = [1, 0], sizes = [1, 256], strides = [1, 1]} : vector<3x256xf32> to vector<1x256xf32>
      %66 = vector.broadcast %65 : vector<1x256xf32> to vector<4x256xf32>
      %67 = arith.mulf %35, %66 : vector<4x256xf32>
      %cst_25 = arith.constant 0.000000e+00 : f32
      %68 = vector.broadcast %cst_25 : f32 to vector<4x16xf32>
      %69 = vector.extract_strided_slice %67 {offsets = [0, 0], sizes = [4, 240], strides = [1, 1]} : vector<4x256xf32> to vector<4x240xf32>
      %70 = tpu.concatenate %68, %69 in 1 : vector<4x16xf32>, vector<4x240xf32> -> vector<4x256xf32>
      %c1 = arith.constant 1 : index
      %c0_26 = arith.constant 0 : index
      %c0_27 = arith.constant 0 : index
      %71 = vector.load %arg2[%c1, %c0_26, %c0_27] : memref<9x4x1xf32, #tpu.memory_space<vmem>>, vector<1x4x1xf32>
      %72 = vector.shape_cast %71 : vector<1x4x1xf32> to vector<4x1xf32>
      %73 = vector.broadcast %72 : vector<4x1xf32> to vector<4x256xf32>
      %74 = arith.mulf %70, %73 : vector<4x256xf32>
      %75 = arith.addf %64, %74 : vector<4x256xf32>
      %c4 = arith.constant 4 : index
      %c0_28 = arith.constant 0 : index
      %c0_29 = arith.constant 0 : index
      %76 = vector.load %arg2[%c4, %c0_28, %c0_29] : memref<9x4x1xf32, #tpu.memory_space<vmem>>, vector<1x4x1xf32>
      %77 = vector.shape_cast %76 : vector<1x4x1xf32> to vector<4x1xf32>
      %78 = vector.broadcast %77 : vector<4x1xf32> to vector<4x256xf32>
      %79 = arith.mulf %67, %78 : vector<4x256xf32>
      %80 = arith.addf %75, %79 : vector<4x256xf32>
      %cst_30 = arith.constant 0.000000e+00 : f32
      %81 = vector.broadcast %cst_30 : f32 to vector<4x16xf32>
      %82 = vector.extract_strided_slice %67 {offsets = [0, 16], sizes = [4, 240], strides = [1, 1]} : vector<4x256xf32> to vector<4x240xf32>
      %83 = tpu.concatenate %82, %81 in 1 : vector<4x240xf32>, vector<4x16xf32> -> vector<4x256xf32>
      %c7 = arith.constant 7 : index
      %c0_31 = arith.constant 0 : index
      %c0_32 = arith.constant 0 : index
      %84 = vector.load %arg2[%c7, %c0_31, %c0_32] : memref<9x4x1xf32, #tpu.memory_space<vmem>>, vector<1x4x1xf32>
      %85 = vector.shape_cast %84 : vector<1x4x1xf32> to vector<4x1xf32>
      %86 = vector.broadcast %85 : vector<4x1xf32> to vector<4x256xf32>
      %87 = arith.mulf %83, %86 : vector<4x256xf32>
      %88 = arith.addf %80, %87 : vector<4x256xf32>
      %cst_33 = arith.constant 0.000000e+00 : f32
      %89 = vector.broadcast %cst_33 : f32 to vector<4x1xf32>
      %90 = vector.extract_strided_slice %35 {offsets = [0, 1], sizes = [4, 255], strides = [1, 1]} : vector<4x256xf32> to vector<4x255xf32>
      %91 = tpu.concatenate %90, %89 in 1 : vector<4x255xf32>, vector<4x1xf32> -> vector<4x256xf32>
      %92 = vector.extract_strided_slice %36 {offsets = [2, 0], sizes = [1, 256], strides = [1, 1]} : vector<3x256xf32> to vector<1x256xf32>
      %93 = vector.broadcast %92 : vector<1x256xf32> to vector<4x256xf32>
      %94 = arith.mulf %91, %93 : vector<4x256xf32>
      %cst_34 = arith.constant 0.000000e+00 : f32
      %95 = vector.broadcast %cst_34 : f32 to vector<4x16xf32>
      %96 = vector.extract_strided_slice %94 {offsets = [0, 0], sizes = [4, 240], strides = [1, 1]} : vector<4x256xf32> to vector<4x240xf32>
      %97 = tpu.concatenate %95, %96 in 1 : vector<4x16xf32>, vector<4x240xf32> -> vector<4x256xf32>
      %c2 = arith.constant 2 : index
      %c0_35 = arith.constant 0 : index
      %c0_36 = arith.constant 0 : index
      %98 = vector.load %arg2[%c2, %c0_35, %c0_36] : memref<9x4x1xf32, #tpu.memory_space<vmem>>, vector<1x4x1xf32>
      %99 = vector.shape_cast %98 : vector<1x4x1xf32> to vector<4x1xf32>
      %100 = vector.broadcast %99 : vector<4x1xf32> to vector<4x256xf32>
      %101 = arith.mulf %97, %100 : vector<4x256xf32>
      %102 = arith.addf %88, %101 : vector<4x256xf32>
      %c5 = arith.constant 5 : index
      %c0_37 = arith.constant 0 : index
      %c0_38 = arith.constant 0 : index
      %103 = vector.load %arg2[%c5, %c0_37, %c0_38] : memref<9x4x1xf32, #tpu.memory_space<vmem>>, vector<1x4x1xf32>
      %104 = vector.shape_cast %103 : vector<1x4x1xf32> to vector<4x1xf32>
      %105 = vector.broadcast %104 : vector<4x1xf32> to vector<4x256xf32>
      %106 = arith.mulf %94, %105 : vector<4x256xf32>
      %107 = arith.addf %102, %106 : vector<4x256xf32>
      %cst_39 = arith.constant 0.000000e+00 : f32
      %108 = vector.broadcast %cst_39 : f32 to vector<4x16xf32>
      %109 = vector.extract_strided_slice %94 {offsets = [0, 16], sizes = [4, 240], strides = [1, 1]} : vector<4x256xf32> to vector<4x240xf32>
      %110 = tpu.concatenate %109, %108 in 1 : vector<4x240xf32>, vector<4x16xf32> -> vector<4x256xf32>
      %c8 = arith.constant 8 : index
      %c0_40 = arith.constant 0 : index
      %c0_41 = arith.constant 0 : index
      %111 = vector.load %arg2[%c8, %c0_40, %c0_41] : memref<9x4x1xf32, #tpu.memory_space<vmem>>, vector<1x4x1xf32>
      %112 = vector.shape_cast %111 : vector<1x4x1xf32> to vector<4x1xf32>
      %113 = vector.broadcast %112 : vector<4x1xf32> to vector<4x256xf32>
      %114 = arith.mulf %110, %113 : vector<4x256xf32>
      %115 = arith.addf %107, %114 : vector<4x256xf32>
      %c0_42 = arith.constant 0 : index
      %c0_43 = arith.constant 0 : index
      %116 = vector.load %arg7[%c0_42, %c0_43] : memref<4x256xf32, #tpu.memory_space<vmem>>, vector<4x256xf32>
      tpu.vector_store %arg7[%c0_42, %c0_43], %115 {strides = array<i32>} : memref<4x256xf32, #tpu.memory_space<vmem>>, vector<4x256xf32>,
    } else {
    }
    %c0 = arith.constant 0 : index
    %c0_1 = arith.constant 0 : index
    %3 = vector.load %arg7[%c0, %c0_1] : memref<4x256xf32, #tpu.memory_space<vmem>>, vector<4x256xf32>
    %c0_2 = arith.constant 0 : index
    %c0_3 = arith.constant 0 : index
    %c0_4 = arith.constant 0 : index
    %4 = vector.load %arg3[%c0_2, %c0_3, %c0_4] : memref<1x4x4xf32, #tpu.memory_space<vmem>>, vector<1x4x4xf32>
    %5 = vector.shape_cast %4 : vector<1x4x4xf32> to vector<4x4xf32>
    %cst = arith.constant 0.000000e+00 : f32
    %6 = vector.broadcast %cst : f32 to vector<4x256xf32>
    %7 = vector.extract_strided_slice %5 {offsets = [0, 0], sizes = [4, 1], strides = [1, 1]} : vector<4x4xf32> to vector<4x1xf32>
    %8 = vector.extract_strided_slice %3 {offsets = [0, 0], sizes = [1, 256], strides = [1, 1]} : vector<4x256xf32> to vector<1x256xf32>
    %9 = vector.broadcast %7 : vector<4x1xf32> to vector<4x256xf32>
    %10 = vector.broadcast %8 : vector<1x256xf32> to vector<4x256xf32>
    %11 = arith.mulf %9, %10 : vector<4x256xf32>
    %12 = arith.addf %6, %11 : vector<4x256xf32>
    %13 = vector.extract_strided_slice %5 {offsets = [0, 1], sizes = [4, 1], strides = [1, 1]} : vector<4x4xf32> to vector<4x1xf32>
    %14 = vector.extract_strided_slice %3 {offsets = [1, 0], sizes = [1, 256], strides = [1, 1]} : vector<4x256xf32> to vector<1x256xf32>
    %15 = vector.broadcast %13 : vector<4x1xf32> to vector<4x256xf32>
    %16 = vector.broadcast %14 : vector<1x256xf32> to vector<4x256xf32>
    %17 = arith.mulf %15, %16 : vector<4x256xf32>
    %18 = arith.addf %12, %17 : vector<4x256xf32>
    %19 = vector.extract_strided_slice %5 {offsets = [0, 2], sizes = [4, 1], strides = [1, 1]} : vector<4x4xf32> to vector<4x1xf32>
    %20 = vector.extract_strided_slice %3 {offsets = [2, 0], sizes = [1, 256], strides = [1, 1]} : vector<4x256xf32> to vector<1x256xf32>
    %21 = vector.broadcast %19 : vector<4x1xf32> to vector<4x256xf32>
    %22 = vector.broadcast %20 : vector<1x256xf32> to vector<4x256xf32>
    %23 = arith.mulf %21, %22 : vector<4x256xf32>
    %24 = arith.addf %18, %23 : vector<4x256xf32>
    %25 = vector.extract_strided_slice %5 {offsets = [0, 3], sizes = [4, 1], strides = [1, 1]} : vector<4x4xf32> to vector<4x1xf32>
    %26 = vector.extract_strided_slice %3 {offsets = [3, 0], sizes = [1, 256], strides = [1, 1]} : vector<4x256xf32> to vector<1x256xf32>
    %27 = vector.broadcast %25 : vector<4x1xf32> to vector<4x256xf32>
    %28 = vector.broadcast %26 : vector<1x256xf32> to vector<4x256xf32>
    %29 = arith.mulf %27, %28 : vector<4x256xf32>
    %30 = arith.addf %24, %29 : vector<4x256xf32>
    %c0_5 = arith.constant 0 : index
    %c0_6 = arith.constant 0 : index
    %c0_7 = arith.constant 0 : index
    %c0_8 = arith.constant 0 : index
    %31 = vector.load %arg6[%c0_5, %c0_6, %c0_7, %c0_8] : memref<1x1x4x256xf32, #tpu.memory_space<vmem>>, vector<1x1x4x256xf32>
    %32 = vector.shape_cast %31 : vector<1x1x4x256xf32> to vector<4x256xf32>
    %33 = vector.shape_cast %30 : vector<4x256xf32> to vector<1x1x4x256xf32>
    tpu.vector_store %arg6[%c0_5, %c0_6, %c0_7, %c0_8], %33 {strides = array<i32>} : memref<1x1x4x256xf32, #tpu.memory_space<vmem>>, vector<1x1x4x256xf32>,
    return
  }
  func.func @transform_0(%arg0: i32, %arg1: i32) -> (i32, i32, i32) {
    %c0_i32 = arith.constant 0 : i32
    %c0_i32_0 = arith.constant 0 : i32
    %c0_i32_1 = arith.constant 0 : i32
    %c0_i32_2 = arith.constant 0 : i32
    return %c0_i32, %c0_i32_0, %c0_i32_1 : i32, i32, i32
  }
  func.func @transform_1(%arg0: i32, %arg1: i32) -> (i32, i32, i32) {
    %c0_i32 = arith.constant 0 : i32
    %c0_i32_0 = arith.constant 0 : i32
    %c0_i32_1 = arith.constant 0 : i32
    return %arg1, %c0_i32, %c0_i32_0 : i32, i32, i32
  }
  func.func @transform_2(%arg0: i32, %arg1: i32) -> (i32, i32) {
    %c0_i32 = arith.constant 0 : i32
    %c0_i32_0 = arith.constant 0 : i32
    %c0_i32_1 = arith.constant 0 : i32
    return %c0_i32, %c0_i32_0 : i32, i32
  }
  func.func @transform_3(%arg0: i32, %arg1: i32) -> (i32, i32, i32) {
    %c0_i32 = arith.constant 0 : i32
    %c0_i32_0 = arith.constant 0 : i32
    %c0_i32_1 = arith.constant 0 : i32
    return %arg0, %c0_i32, %c0_i32_0 : i32, i32, i32
  }
  func.func @transform_4(%arg0: i32, %arg1: i32) -> (i32, i32, i32, i32) {
    %c0_i32 = arith.constant 0 : i32
    %c0_i32_0 = arith.constant 0 : i32
    %c0_i32_1 = arith.constant 0 : i32
    return %arg0, %arg1, %c0_i32, %c0_i32_0 : i32, i32, i32, i32
  }
}

</mosaic_0001>

<bundles_post_ra>
// kernel: tpu_custom_call.1
= control target key start
LH: loop header
LB: loop body
LE: loop exit
PB: predicated region body
PF: predicated region fallthrough
CT: control target
= control target key end

     0   :  { %9 = vsyncpa [#allocation4], 0  ;;  %s1175_s0 = inlined_call_operand.vmem [shape: f32[9,4,1], index: 0, kind: input, shape index: {}]   ;;  %s1176_s1 = inlined_call_operand.vmem [shape: f32[2,4,4], index: 1, kind: input, shape index: {}]   ;;  %s1177_s2 = inlined_call_operand.vmem [shape: f32[3,256], index: 2, kind: input, shape index: {}]   ;;  %s1178_s3 = inlined_call_operand.vmem [shape: f32[2,4,256], index: 3, kind: input, shape index: {}]   ;;  %s1179_s4 = inlined_call_operand.hbm [shape: f32[2,2,4,256], index: 4, kind: output, shape index: {}]  }
   0x1   :  { %11 = vsyncpa [#allocation4 + $0x1], 0  ;;  %s946_s15 = smov 0   ;;  %s948_s16 = smov 0  }
   0x2   :  { %s950_s17 = smov 0   ;;  %s952_s18 = smov 0  }
   0x3   :  { %s954_s19 = smov 0   ;;  %s956_s20 = smov 0  }
   0x4   :  { %s958_s21 = smov 0   ;;  %s960_s22 = smov 0  }
   0x5 LB: > { %s700_s23 = sadd.s32 4294967295, %s908_s22   ;;  %s701_s24 = sadd.s32 4294967294, %s908_s22   ;;  %s908_s22 = sphi %s960_s22, %s17_s22   ;;  %s904_s21 = sphi %s958_s21, %s1193_s21   ;;  %s900_s20 = sphi %s956_s20, %s1192_s20   ;;  %s896_s19 = sphi %s954_s19, %s1191_s19   ;;  %s892_s18 = sphi %s952_s18, %s1190_s18   ;;  %s888_s17 = sphi %s950_s17, %s1189_s17   ;;  %s884_s16 = sphi %s948_s16, %s1188_s16   ;;  %s880_s15 = sphi %s946_s15, %s1187_s15  }
   0x6   : > { %s26_s25 = sadd.s32 1, %s900_s20  ;;  %s29_s26 = sadd.s32 1, %s904_s21 }
   0x7   : > { %p27_p0 = scmp.ge.s32.totalorder %s26_s25, 2  ;;  %p142_p1 = scmp.ne.s32.totalorder %s888_s17, %s884_s16 }
   0x8   : > { %p143_p2 = scmp.eq.s32.totalorder %s700_s23, 3  ;;  %p148_p5 = scmp.ne.s32.totalorder %s884_s16, %s880_s15 }
   0x9   : > { %s1195_s25 = smov (%p27_p0, %s26_s25), 0  ;;  %s1197_s26 = smov (!%p27_p0, %s29_s26), %s904_s21 }
   0xa   : > { %s128_s27 = ssub.s32 %s900_s20, %s1195_s25  ;;  %p997_p3 = por %p143_p2, %p142_p1 }
   0xb   : > { %p31_p4 = scmp.ge.s32.totalorder %s1197_s26, 2  ;;  %p149_p6 = scmp.eq.s32.totalorder %s701_s24, 3 }
   0xc   : > { %p704_p7 = scmp.ge.s32.totalorder %s908_s22, 1  ;;  %p188_p9 = scmp.lt.s32.totalorder %s908_s22, 5 }
   0xd   : > { %s1199_s26 = smov (%p31_p4, %s1197_s26), 0  ;;  %p1006_p8 = por %p149_p6, %p148_p5 }
   0xe   : > { %1183 = sst [smem:[#allocation6_spill]] %s1199_s26  ;;  %s127_s30 = ssub.s32 %s904_s21, %s1199_s26 }
   0xf   : > { %s132_s5 = sadd.s32 1, %s888_s17  ;;  %s129_s6 = sor.u32 %s128_s27, %s127_s30 }
  0x10   : > { %p189_p10 = pnand %p704_p7, %p188_p9  ;;  %p130_p11 = scmp.eq.s32.totalorder %s129_s6, 0 }
  0x11   : > { %s1180_s8 = sand.u32 (!%p189_p10), 1, %s884_s16   ;;  %p218_p12 = scmp.lt.s32.totalorder (!%p189_p10), %s892_s18, 1 }
  0x12   : > { %s1015_s7 = scalar_select %p130_p11, %s888_s17, %s132_s5  }
  0x13   : > { %192 = sbr.rel (%p189_p10) target bundleno = 465 (0x1d1), region = 36  ;;  %s1021_s9 = sshll.u32 (!%p189_p10), %s1180_s8, 3 }
  0x14   : > { %p222_p13 = scmp.lt.s32.totalorder (!%p189_p10), %s896_s19, 1  ;;  %s217_s6 = scalar_lea.vmem (!%p189_p10), [#allocation3], %s1021_s9 }
  0x15   : > { %p709_p0 = scmp.ne.s32.totalorder (!%p189_p10), %s892_s18, 0 }
  0x1a   : > { %s219_s10 = scalar_select %p218_p12, %s892_s18, 1 }
  0x1b   : > { %s223_s11 = scalar_select %p222_p13, %s896_s19, 1 }
  0x1c   : > { %s706_s12 = sshll.u32 %s219_s10, 2  ;;  %230 = sbr.rel (%p709_p0) target bundleno = 306 (0x132), region = 40  ;;  %v245_v1 = vlaneseq (!%p709_p0)  ;;  %v912_v4 = vmov (!%p709_p0), 0   ;;  %v232_v5 = vld [vmem:[%s1177_s2] sm:$0x77] (!%p709_p0)  ;;  %vm239_vm0 = vcmask (!%p709_p0), 7168  }
  0x1d   : > { %s1029_s23 = scalar_lea.vmem %s1176_s1, %s706_s12  ;;  %s724_s24 = sshll.u32 %s223_s11, 3  ;;  %807 = vset.pattern.permute.xlu1 (!%p709_p0), %v912_v4  ;;  %806 = vset.pattern.permute.xlu0 (!%p709_p0), %v912_v4  ;;  %v710_v14 = vld [vmem:[%s1175_s0 + $0xc] sm:$0xf] (!%p709_p0)  ;;  %v276_v15 = vld [vmem:[%s1175_s0] sm:$0xf] (!%p709_p0)  ;;  %vm404_vm1 = vcmask (!%p709_p0), 1039360  }
  0x1e   : > { %s226_s5 = scalar_lea.vmem %s1178_s3, %s724_s24  ;;  %s910_s8 = smov (!%p709_p0), 127   ;;  %v1036_v3 = vshrl.u32 (!%p709_p0), %v245_v1, 7  ;;  %v713_v27 = vld [vmem:[%s1175_s0 + $0x10] sm:$0xf] (!%p709_p0)  ;;  %v711_v28 = vld [vmem:[%s1175_s0 + $0x18] sm:$0xf] (!%p709_p0) }
  0x1f   : > { %v231_v0 = vld [vmem:[%s226_s5] sm:$0xff] (!%p709_p0)  ;;  %s911_s26 = smov (!%p709_p0), 1   ;;  %v714_v30 = vld [vmem:[%s1175_s0 + $0x1c] sm:$0xf] (!%p709_p0)  ;;  %s913_s13 = smov (!%p709_p0), 16   ;;  %vm271_vm2 = vcmask (!%p709_p0), 130048  }
  0x20   : > { %400 = vrot.lane.b32.xlu1 (!%p709_p0), %v231_v0, %s910_s8  ;;  %235 = vrot.lane.b32.xlu0 (!%p709_p0), %v231_v0, %s911_s26  ;;  %v234_v2 = vcombine.high (!%p709_p0), %v231_v0, %v231_v0  ;;  %v319_v6 = vsub.s32 (!%p709_p0), 1, %v1036_v3  ;;  %v323_v7 = vsub.s32 (!%p709_p0), 5, %v1036_v3  ;;  %v247_v8 = vsub.s32 (!%p709_p0), 0, %v1036_v3  ;;  %v712_v31 = vld [vmem:[%s1175_s0 + $0x4] sm:$0xf] (!%p709_p0)  ;;  %s914_s27 = smov (!%p709_p0), 112  }
  0x21   : > { %v251_v9 = vsub.s32 (!%p709_p0), 4, %v1036_v3  ;;  %v411_v10 = vsub.s32 (!%p709_p0), 2, %v1036_v3  ;;  %v415_v11 = vsub.s32 (!%p709_p0), 6, %v1036_v3  ;;  %v716_v33 = vld [vmem:[%s1175_s0 + $0x14] sm:$0xf] (!%p709_p0)  ;;  %vm301_vm3 = vcmask (!%p709_p0), 916480  }
  0x22   : > { %v320_v12 = vrot.slane (!%p709_p0), %v232_v5, %v319_v6  ;;  %v324_v13 = vrot.slane (!%p709_p0), %v232_v5, %v323_v7  ;;  %v248_v16 = vrot.slane (!%p709_p0), %v232_v5, %v247_v8  ;;  %v715_v34 = vld [vmem:[%s1175_s0 + $0x8] sm:$0xf] (!%p709_p0)  ;;  %v717_v46 = vld [vmem:[%s1175_s0 + $0x20] sm:$0xf] (!%p709_p0)  ;;  %v915_v56 = vmov (!%p709_p0), 839922192  }
  0x23   : > { %v252_v17 = vrot.slane %v232_v5, %v251_v9  ;;  %v412_v18 = vrot.slane %v232_v5, %v411_v10  ;;  %v416_v19 = vrot.slane %v232_v5, %v415_v11  ;;  %v368_v57 = vunpack.c.l.s4 %v915_v56 }
  0x24   : > { %402 = vrot.lane.b32.xlu1 %v234_v2, %s910_s8  ;;  %237 = vrot.lane.b32.xlu0 %v234_v2, %s911_s26  ;;  %v330_v20 = vrot.slane %v320_v12, %v319_v6  ;;  %v334_v21 = vrot.slane %v324_v13, %v319_v6  ;;  %v258_v22 = vrot.slane %v248_v16, %v247_v8 }
  0x25   : > { %v262_v23 = vrot.slane %v252_v17, %v247_v8  ;;  %v422_v24 = vrot.slane %v412_v18, %v411_v10  ;;  %v426_v25 = vrot.slane %v416_v19, %v411_v10  ;;  %v369_v59 = vunpack.c.0.s8 %v368_v57 }
  0x26   : > { %v337_v26 = vcombine.low %v330_v20, %v334_v21 }
  0x27   : > { %v372_v62 = vsub.s32 %v369_v59, %v1036_v3 }
  0x28   : > { %290 = vperm.xlu1 %807, %v710_v14   ;;  %279 = vperm.xlu0 %806, %v276_v15   ;;  %v1059_v29 = vmul.f32 %v337_v26, %v231_v0 }
  0x2a   : > { %v341_v32 = vcombine.high %v1059_v29, %v1059_v29 }
  0x2c   : > { %365 = vperm.xlu0 %806, %v713_v27   ;;  %310 = vperm.xlu1 %807, %v711_v28  }
  0x30   : > { %393 = vperm.xlu0 %806, %v714_v30   ;;  %354 = vperm.xlu1 %807, %v712_v31  }
  0x34   : > { %344 = vrot.lane.b32.xlu0 %v341_v32, %s913_s13  ;;  %342 = vrot.lane.b32.xlu1 %v1059_v29, %s913_s13 }
  0x38   : > { %454 = vperm.xlu0 %806, %v716_v33   ;;  %443 = vperm.xlu1 %807, %v715_v34  }
  0x3c   : > { %381 = vrot.lane.b32.xlu1 %v1059_v29, %s914_s27 }
  0x92   : > { %v236_v35 = vpop.permute.xlu0 %235  ;;  %v401_v36 = vpop.permute.xlu1 %400 }
  0x93   : > { %v243_v37 = vsel %vm239_vm0, 0.0, %v236_v35 }
  0x94   : > { %v263_v38 = vmul.f32 %v258_v22, %v243_v37 }
  0x96   : > { %267 = vrot.lane.b32.xlu0 %v263_v38, %s913_s13  ;;  %v238_v39 = vpop.permute.xlu0 %237  ;;  %v403_v42 = vpop.permute.xlu1 %402 }
  0x97   : > { %v240_v40 = vsel %vm239_vm0, %v236_v35, %v238_v39  ;;  %v405_v43 = vsel %vm404_vm1, %v401_v36, %v403_v42  ;;  %v408_v45 = vsel %vm404_vm1, %v403_v42, 0.0 }
  0x98   : > { %v264_v41 = vmul.f32 %v262_v23, %v240_v40  ;;  %v1081_v44 = vmul.f32 %v422_v24, %v405_v43  ;;  %v1086_v47 = vmul.f32 %v426_v25, %v408_v45 }
  0x9a   : > { %297 = vrot.lane.b32.xlu0 %v263_v38, %s914_s27  ;;  %269 = vrot.lane.b32.xlu1 %v264_v41, %s913_s13 }
  0x9e   : > { %383 = vrot.lane.b32.xlu0 %v341_v32, %s914_s27  ;;  %299 = vrot.lane.b32.xlu1 %v264_v41, %s914_s27 }
  0xa2   : > { %431 = vrot.lane.b32.xlu0 %v1081_v44, %s913_s13  ;;  %473 = vperm.xlu1 %807, %v717_v46  }
  0xa6   : > { %461 = vrot.lane.b32.xlu0 %v1081_v44, %s914_s27  ;;  %433 = vrot.lane.b32.xlu1 %v1086_v47, %s913_s13 }
  0xa7   : > { %v291_v48 = vpop.permute.xlu1 %290  ;;  %v280_v49 = vpop.permute.xlu0 %279 }
  0xa8   : > { %v293_v8 = vmul.f32 %v291_v48, %v263_v38  ;;  %v294_v9 = vmul.f32 %v291_v48, %v264_v41 }
  0xaa   : > { %463 = vrot.lane.b32.xlu1 %v1086_v47, %s914_s27 }
  0xab   : > { %v311_v50 = vpop.permute.xlu1 %310  ;;  %v366_v51 = vpop.permute.xlu0 %365 }
  0xac   : > { %v373_v1 = vrot.slane %v366_v51, %v372_v62 }
  0xae   : > { %v375_v10 = vmul.f32 %v373_v1, %v1059_v29 }
  0xaf   : > { %v355_v52 = vpop.permute.xlu1 %354  ;;  %v394_v53 = vpop.permute.xlu0 %393 }
  0xb0   : > { %v377_v26 = vcombine.high %v375_v10, %v375_v10 }
  0xb3   : > { %v343_v54 = vpop.permute.xlu1 %342  ;;  %v345_v55 = vpop.permute.xlu0 %344 }
  0xb4   : > { %v346_v3 = vsel %vm271_vm2, %v343_v54, %v345_v55  ;;  %v349_v13 = vsel %vm271_vm2, 0.0, %v343_v54 }
  0xb5   : > { %v357_v20 = vmul.f32 %v355_v52, %v349_v13  ;;  %v358_v21 = vmul.f32 %v355_v52, %v346_v3 }
  0xb7   : > { %v444_v58 = vpop.permute.xlu1 %443  ;;  %v455_v60 = vpop.permute.xlu0 %454 }
  0xb8   : > { %v457_v35 = vmul.f32 %v455_v60, %v1081_v44  ;;  %v458_v46 = vmul.f32 %v455_v60, %v1086_v47 }
  0xbb   : > { %v382_v61 = vpop.permute.xlu1 %381 }
 0x108   : > { %v268_v63 = vpop.permute.xlu0 %267 }
 0x109   : > { %v275_v0 = vsel %vm271_vm2, 0.0, %v268_v63 }
 0x10a   : > { %v282_v6 = vmul.f32 %v280_v49, %v275_v0 }
 0x10c   : > { %v270_v2 = vpop.permute.xlu1 %269  ;;  %v298_v4 = vpop.permute.xlu0 %297  ;;  %v295_v16 = vadd.f32 %v293_v8, %v282_v6 }
 0x10d   : > { %v272_v5 = vsel %vm271_vm2, %v268_v63, %v270_v2 }
 0x10e   : > { %v283_v7 = vmul.f32 %v280_v49, %v272_v5 }
 0x110   : > { %v300_v11 = vpop.permute.xlu1 %299  ;;  %v384_v12 = vpop.permute.xlu0 %383  ;;  %v296_v17 = vadd.f32 %v294_v9, %v283_v7 }
 0x111   : > { %v302_v14 = vsel %vm301_vm3, %v298_v4, %v300_v11  ;;  %v305_v15 = vsel %vm301_vm3, %v300_v11, 0.0  ;;  %v385_v25 = vsel %vm301_vm3, %v382_v61, %v384_v12  ;;  %v388_v39 = vsel %vm301_vm3, %v384_v12, 0.0 }
 0x112   : > { %v313_v18 = vmul.f32 %v311_v50, %v302_v14  ;;  %v314_v19 = vmul.f32 %v311_v50, %v305_v15  ;;  %v396_v32 = vmul.f32 %v394_v53, %v385_v25  ;;  %v397_v40 = vmul.f32 %v394_v53, %v388_v39 }
 0x114   : > { %v315_v22 = vadd.f32 %v313_v18, %v295_v16  ;;  %v316_v23 = vadd.f32 %v314_v19, %v296_v17  ;;  %v432_v24 = vpop.permute.xlu0 %431 }
 0x115   : > { %v438_v29 = vsel %vm271_vm2, 0.0, %v432_v24 }
 0x116   : > { %v359_v27 = vadd.f32 %v357_v20, %v315_v22  ;;  %v360_v28 = vadd.f32 %v358_v21, %v316_v23  ;;  %v446_v34 = vmul.f32 %v444_v58, %v438_v29 }
 0x118   : > { %v379_v30 = vadd.f32 %v375_v10, %v359_v27  ;;  %v380_v31 = vadd.f32 %v377_v26, %v360_v28  ;;  %v462_v48 = vpop.permute.xlu0 %461 }
 0x11a   : > { %v398_v33 = vadd.f32 %v396_v32, %v379_v30  ;;  %v399_v43 = vadd.f32 %v397_v40, %v380_v31 }
 0x11c   : > { %v448_v36 = vadd.f32 %v446_v34, %v398_v33 }
 0x11e   : > { %v459_v37 = vadd.f32 %v457_v35, %v448_v36 }
 0x121   : > { %v474_v38 = vpop.permute.xlu1 %473 }
 0x125   : > { %v434_v41 = vpop.permute.xlu1 %433 }
 0x126   : > { %v435_v42 = vsel %vm271_vm2, %v432_v24, %v434_v41 }
 0x127   : > { %v447_v45 = vmul.f32 %v444_v58, %v435_v42 }
 0x129   : > { %v449_v49 = vadd.f32 %v447_v45, %v399_v43  ;;  %v464_v50 = vpop.permute.xlu1 %463 }
 0x12a   : > { %v465_v51 = vsel %vm301_vm3, %v462_v48, %v464_v50  ;;  %v468_v44 = vsel %vm301_vm3, %v464_v50, 0.0 }
 0x12b   : > { %v460_v52 = vadd.f32 %v458_v46, %v449_v49  ;;  %v476_v54 = vmul.f32 %v474_v38, %v465_v51  ;;  %v477_v55 = vmul.f32 %v474_v38, %v468_v44 }
 0x12d   : > { %v478_v56 = vadd.f32 %v476_v54, %v459_v37  ;;  %v479_v57 = vadd.f32 %v477_v55, %v460_v52 }
 0x12f   : > { %v482_v53 = vcombine.low %v478_v56, %v479_v57 }
 0x131   : > { %484 = vst [vmem:[#allocation2] sm:$0xff] %v482_v53 }
 0x132 PF: > { %v486_v59 = vld [vmem:[%s1029_s23] sm:$0xf]  ;;  %v916_v58 = vmov 0   ;;  %v917_v47 = vmov 2   ;;  %v918_v60 = vmov 1   ;;  %v919_v61 = vmov 3  }
 0x133   : > { %809 = vset.pattern.permute.xlu0 %v916_v58  ;;  %811 = vset.pattern.permute.xlu1 %v917_v47  ;;  %v493_v62 = vlaneseq  ;;  %s719_s23 = sshll.u32 %s892_s18, 1  ;;  %s720_s10 = sshll.u32 %s896_s19, 2 }
 0x134   : > { %489 = vperm.xlu0 %809, %v486_v59   ;;  %542 = vperm.xlu1 %811, %v486_v59   ;;  %s611_s11 = sadd.s32 %s720_s10, %s719_s23  ;;  %s615_s18 = sshll.u32 %s217_s6, 4  ;;  %s1120_s18 = int_to_ptr.vmem [resolvable:$true] %s615_s18 }
 0x135   : > { %v494_v63 = vshrl.u32 %v493_v62, 7  ;;  %s721_s12 = sshll.u32 %s611_s11, 6  ;;  %s1185_s24 = sand.u32 1, %s884_s16  }
 0x136   : > { %s1118_s14 = scalar_lea.hbm %s1179_s4, %s721_s12  ;;  %s599_s26 = scalar_lea.sflag [#allocation4], %s1185_s24 }
 0x137   : > { %v495_v0 = vsub.s32 0, %v494_v63  ;;  %v499_v1 = vsub.s32 4, %v494_v63  ;;  %v521_v2 = vsub.s32 1, %v494_v63  ;;  %v525_v4 = vsub.s32 5, %v494_v63  ;;  %s814_s8 = scalar_lea.vmem %s1120_s18, 128  ;;  %s920_s27 = smov [#allocation3]  }
 0x138   : > { %810 = vset.pattern.permute.xlu0 %v918_v60  ;;  %812 = vset.pattern.permute.xlu1 %v919_v61  ;;  %v485_v5 = vld [vmem:[#allocation2] sm:$0xff]  ;;  %v547_v6 = vsub.s32 2, %v494_v63  ;;  %v551_v7 = vsub.s32 6, %v494_v63  ;;  %v573_v8 = vsub.s32 3, %v494_v63  ;;  %v577_v9 = vsub.s32 7, %v494_v63  ;;  %p815_p1 = scmp.ne.s32.totalorder %s1120_s18, %s814_s8  ;;  %s818_s30 = sshll.u32 %s920_s27, 4  ;;  %s819_s30 = int_to_ptr.vmem [resolvable:$false] %s818_s30 }
 0x139   : > { %516 = vperm.xlu0 %810, %v486_v59   ;;  %568 = vperm.xlu1 %812, %v486_v59   ;;  %v496_v10 = vrot.slane %v485_v5, %v495_v0  ;;  %v500_v11 = vrot.slane %v485_v5, %v499_v1  ;;  %v522_v12 = vrot.slane %v485_v5, %v521_v2  ;;  %s820_s5 = scalar_lea.vmem %s819_s30, 256  ;;  %p821_p5 = scmp.lt.s32.totalorder %s1120_s18, %s819_s30 }
 0x13a   : > { %v526_v3 = vrot.slane %v485_v5, %v525_v4  ;;  %v548_v13 = vrot.slane %v485_v5, %v547_v6  ;;  %v552_v14 = vrot.slane %v485_v5, %v551_v7  ;;  %v574_v17 = vrot.slane %v485_v5, %v573_v8  ;;  %p816_p2 = pnand %p815_p1, %p997_p3  ;;  %p822_p6 = scmp.lt.s32.totalorder %s820_s5, %s814_s8 }
 0x13b   : > { %v578_v18 = vrot.slane %v485_v5, %v577_v9  ;;  %v506_v19 = vrot.slane %v496_v10, %v495_v0  ;;  %v510_v20 = vrot.slane %v500_v11, %v495_v0  ;;  %v532_v21 = vrot.slane %v522_v12, %v521_v2 }
 0x13c   : > { %v536_v22 = vrot.slane %v526_v3, %v521_v2  ;;  %v558_v23 = vrot.slane %v548_v13, %v547_v6  ;;  %v562_v24 = vrot.slane %v552_v14, %v547_v6  ;;  %v584_v25 = vrot.slane %v574_v17, %v573_v8  ;;  %p817_p4 = pneg %p816_p2  ;;  %p823_p7 = por %p822_p6, %p821_p5 }
 0x13d   : > { %813 = vset.pattern.permute.xlu0 %v919_v61  ;;  %v588_v26 = vrot.slane %v578_v18, %v573_v8 }
 0x13e   : > { %p824_p9 = pnand %p823_p7, %p817_p4 }
 0x1b3   : > { %v490_v15 = vpop.permute.xlu0 %489  ;;  %v543_v16 = vpop.permute.xlu1 %542 }
 0x1b4   : > { %v511_v29 = vmul.f32 %v506_v19, %v490_v15  ;;  %v512_v30 = vmul.f32 %v510_v20, %v490_v15  ;;  %v563_v33 = vmul.f32 %v558_v23, %v543_v16  ;;  %v564_v34 = vmul.f32 %v562_v24, %v543_v16 }
 0x1b8   : > { %v517_v27 = vpop.permute.xlu0 %516  ;;  %v569_v28 = vpop.permute.xlu1 %568 }
 0x1b9   : > { %v537_v31 = vmul.f32 %v532_v21, %v517_v27  ;;  %v538_v32 = vmul.f32 %v536_v22, %v517_v27  ;;  %v589_v37 = vmul.f32 %v584_v25, %v569_v28  ;;  %v590_v38 = vmul.f32 %v588_v26, %v569_v28 }
 0x1bb   : > { %v539_v35 = vadd.f32 %v537_v31, %v511_v29  ;;  %v540_v36 = vadd.f32 %v538_v32, %v512_v30 }
 0x1bd   : > { %v565_v39 = vadd.f32 %v563_v33, %v539_v35  ;;  %v566_v40 = vadd.f32 %v564_v34, %v540_v36 }
 0x1bf   : > { %v591_v41 = vadd.f32 %v589_v37, %v565_v39  ;;  %v592_v42 = vadd.f32 %v590_v38, %v566_v40 }
 0x1c1   : > { %v595_v43 = vcombine.low %v591_v41, %v592_v42 }
 0x1c3   : > { %597 = vst [vmem:[%s217_s6] sm:$0xff] %v595_v43 }
 0x1c4   : > { %827 = shalt.err (!%p824_p9)
}
 0x1c5   : > { %s828_s9 = scalar_lea.hbm %s1118_s14, 128  ;;  %s832_s10 = scalar_lea.hbm %s1179_s4, 512 }
 0x1c6   : > { %p829_p10 = scmp.ne.s32.totalorder %s1118_s14, %s828_s9  ;;  %p833_p13 = scmp.lt.u32.totalorder %s1118_s14, %s1179_s4 }
 0x1c7   : > { %p834_p0 = scmp.lt.u32.totalorder %s832_s10, %s828_s9  ;;  %p836_p2 = scmp.lt.u32.totalorder %s828_s9, %s1118_s14 }
 0x1c8   : > { %p830_p11 = pnand %p829_p10, %p997_p3 }
 0x1c9   : > { %p835_p1 = por %p834_p0, %p833_p13 }
 0x1ca   : > { %p831_p12 = pneg %p830_p11 }
 0x1cb   : > { %p837_p4 = por %p836_p2, %p835_p1 }
 0x1cd   : > { %p838_p5 = pnand %p837_p4, %p831_p12 }
 0x1cf   : > { %841 = shalt.err (!%p838_p5)
}
 0x1d0   : > { %725 = dma.vmem_to_hbm [thread:$0]  (%p997_p3), %s1120_s18, 128, %s1118_s14, %s599_s26  }
 0x1d1 PF: > { %p731_p6 = scmp.ge.s32.totalorder %s908_s22, 2  ;;  %s627_s19 = sand.u32 1, %s880_s15  }
 0x1d2   : > { %s628_s13 = scalar_lea.sflag [#allocation4], %s627_s19 }
 0x1d3   : > { %p728_p7 = pnand %p731_p6, %p1006_p8 }
 0x1d5   : > { %875 = dma.done.wait (!%p728_p7), %s628_s13, 128  }
 0x1d6   : > { %877 = vsyncadd (!%p728_p7), %s628_s13, 4294967168  ;;  %s17_s22 = sadd.s32 1, %s908_s22   ;;  %s1186_s28 = sld [smem:[#allocation6_spill]] }
 0x1d7   : > { %p14_p9 = scmp.ge.s32.totalorder %s17_s22, 6   ;;  %s1187_s15 = smov %s884_s16 }
 0x1d8   : > { %s1188_s16 = smov %s888_s17  ;;  %s1189_s17 = smov %s1015_s7 }
 0x1d9   : > { %s1190_s18 = smov %s900_s20  ;;  %s1191_s19 = smov %s904_s21 }
 0x1da   : > { %s1192_s20 = smov %s1195_s25  ;;  %16 = sbr.rel (!%p14_p9) target bundleno = 5 (0x5), region = 86 }
 0x1dc   : > { %s1193_s21 = smov %s1186_s28 }
 0x1e1   :  { %633 = vsyncpa [#allocation4], 1 }
 0x1e2   :  { %635 = vsyncpa [#allocation4 + $0x1], 1 }

</bundles_post_ra>
